<compile_context>
chip_gen: v7x
topology: tpu7x:2x2x1
jax: 0.10.0
libtpu: 0.0.40
codegen_flags: <defaults>
</compile_context>

<pallas_src>
import math
from functools import partial

import jax
import jax.numpy as jnp
from jax.experimental import pallas as pl
from jax.experimental.pallas import tpu as pltpu


def _round_up(x, m):
    return ((x + m - 1) // m) * m


def _divisors_desc(total, cap):
    """Divisors of `total` that are multiples of 128 and <= cap, descending."""
    n = total // 128
    out = []
    for d in range(n, 0, -1):
        if n % d == 0:
            t = 128 * d
            if t <= cap:
                out.append(t)
    return out


def _vmem_budget_and_limit():
    """Per-generation VMEM budget: ~3/4 of physical capacity, capped at 96 MiB.

    v7x (64 MiB physical) -> 48 MiB limit; v5e/v6e (128 MiB) -> 96 MiB limit.
    """
    try:
        cap = pltpu.get_tpu_info().vmem_capacity_bytes
    except Exception:
        cap = 64 * 1024 * 1024  # conservative (v7x-sized) fallback
    limit = min((cap * 3) // 4, 96 * 1024 * 1024)
    budget = limit - 4 * 1024 * 1024  # headroom for compiler-internal scratch
    return budget, limit


# ---------------------------------------------------------------------------
# Kernels
# ---------------------------------------------------------------------------

def _fused_linear_kernel_2d(x_ref, w_ref, b_ref, o_ref):
    """Full-K tile: o = x @ w + b in a single step (no reduction grid axis).

    x_ref: (tm, Dp) bf16   w_ref: (Dp, tn) bf16   b_ref: (1, tn) f32
    o_ref: (tm, tn) f32
    """
    o_ref[...] = (jnp.dot(x_ref[...], w_ref[...],
                          preferred_element_type=jnp.float32)
                  + b_ref[...]).astype(o_ref.dtype)


def _fused_linear_kernel_3d(x_ref, w_ref, b_ref, o_ref):
    """K-grid fallback: accumulate directly into the resident f32 output block.

    The output block index is constant across the K axis, so o_ref stays in
    VMEM; it is initialised with the broadcast bias at k==0 (no acc scratch,
    no epilogue add).
    """
    k = pl.program_id(2)

    @pl.when(k == 0)
    def _():
        o_ref[...] = jnp.broadcast_to(b_ref[...], o_ref.shape).astype(o_ref.dtype)

    o_ref[...] += jnp.dot(x_ref[...], w_ref[...],
                          preferred_element_type=jnp.float32)


def fused_linear(x2d, w_t, bias_2d, *, tm, tn, tk, vmem_limit):
    """y = x2d @ w_t + bias, f32 accumulation / output.

    x2d:     (Mp, Dp) bf16 (padded to tile multiples)
    w_t:     (Dp, Cp) bf16 (pre-transposed, 128-padded fused weight)
    bias_2d: (1, Cp)  f32
    returns: (Mp, Cp) f32
    """
    Mp, Dp = x2d.shape
    _, Cp = w_t.shape

    cost = pl.CostEstimate(
        flops=2 * Mp * Dp * Cp,
        transcendentals=0,
        bytes_accessed=(x2d.size * x2d.dtype.itemsize
                        + w_t.size * w_t.dtype.itemsize
                        + bias_2d.size * 4
                        + Mp * Cp * 4),
    )

    if tk == Dp:
        # Collapsed reduction axis: one matmul per (M, C) output tile.
        grid = (Mp // tm, Cp // tn)
        kernel = _fused_linear_kernel_2d
        in_specs = [
            pl.BlockSpec((tm, Dp), lambda i, j: (i, 0)),   # activations
            pl.BlockSpec((Dp, tn), lambda i, j: (0, j)),   # weights
            pl.BlockSpec((1, tn), lambda i, j: (0, j)),    # bias
        ]
        out_specs = pl.BlockSpec((tm, tn), lambda i, j: (i, j))
        dims = ("parallel", "parallel")
    else:
        # Large-D fallback: K grid axis, accumulate into the resident output.
        grid = (Mp // tm, Cp // tn, Dp // tk)
        kernel = _fused_linear_kernel_3d
        in_specs = [
            pl.BlockSpec((tm, tk), lambda i, j, k: (i, k)),
            pl.BlockSpec((tk, tn), lambda i, j, k: (k, j)),
            pl.BlockSpec((1, tn), lambda i, j, k: (0, j)),
        ]
        out_specs = pl.BlockSpec((tm, tn), lambda i, j, k: (i, j))
        dims = ("parallel", "parallel", "arbitrary")

    # TODO(synk): emit bf16 output when M*C writeback becomes a meaningful
    # fraction of HBM traffic (irrelevant at the tiny-M regime this head sees).
    return pl.pallas_call(
        kernel,
        out_shape=jax.ShapeDtypeStruct((Mp, Cp), jnp.float32),
        grid_spec=pltpu.PrefetchScalarGridSpec(
            num_scalar_prefetch=0,
            grid=grid,
            in_specs=in_specs,
            out_specs=out_specs,
        ),
        compiler_params=pltpu.CompilerParams(
            dimension_semantics=dims,
            vmem_limit_bytes=vmem_limit,
        ),
        cost_estimate=cost,
    )(x2d, w_t, bias_2d)


# ---------------------------------------------------------------------------
# Jitted forward: slice / flatten / cast / pad / kernel / split fused together
# ---------------------------------------------------------------------------

@partial(jax.jit, static_argnames=("num_v_queries", "class_sizes", "tm", "tn",
                                   "tk", "mp", "compute_dtype", "vmem_limit"))
def _visual_cls_forward(x, w_t, b, *, num_v_queries, class_sizes, tm, tn, tk,
                        mp, compute_dtype, vmem_limit):
    B, S, D = x.shape
    M = B * num_v_queries
    Dp, Cp = w_t.shape

    # Trailing-query slice + flatten (torch.flatten(..., 0, 1)) + bf16 cast +
    # pad to (Mp, Dp), all inside the same XLA program as the kernel.
    xq = x[:, S - num_v_queries:, :].reshape(M, D).astype(compute_dtype)
    x2d = jnp.pad(xq, ((0, mp - M), (0, Dp - D)))

    out = fused_linear(x2d, w_t, b, tm=tm, tn=tn, tk=tk,
                       vmem_limit=vmem_limit)                 # (Mp, Cp) f32
    c_total = sum(class_sizes)
    out = out[:M, :c_total]

    if len(class_sizes) == 3:
        c0, c1, _ = class_sizes
        return out[:, :c0], out[:, c0:c0 + c1], out[:, c0 + c1:]
    return None, None, out


class VisualCLSHeadPallas:
    """JAX/Pallas re-implementation of VisualCLSHead.forward."""

    _TM_CAP = 1024    # single M tile for any realistic B*Q (weight streamed once)
    _TN_CAP = 2048    # hard cap on the class-axis tile width

    def __init__(self, num_class, d_model, key, compute_dtype=jnp.bfloat16):
        self.include_verb_noun = isinstance(num_class, (list, tuple))
        self.compute_dtype = compute_dtype
        bias_value = -math.log((1 - 0.01) / 0.01)

        class_sizes = list(num_class) if self.include_verb_noun else [num_class]
        bound = 1.0 / math.sqrt(d_model)
        keys = jax.random.split(key, len(class_sizes))
        ws, bs = [], []
        for k, c in zip(keys, class_sizes):
            # nn.Linear-like init (+-1/sqrt(d_model)); constant bias.
            w = jax.random.uniform(k, (c, d_model), jnp.float32,
                                   minval=-bound, maxval=bound)
            b = jnp.full((c,), bias_value, dtype=jnp.float32)
            ws.append(w)
            bs.append(b)

        # Per-head f32 params kept for reference / inspection.
        if self.include_verb_noun:
            self.w_verb, self.w_noun, self.w_action = ws
            self.b_verb, self.b_noun, self.b_action = bs
        else:
            (self.w_action,) = ws
            (self.b_action,) = bs

        self.class_sizes = tuple(class_sizes)
        self.c_total = sum(class_sizes)
        self.d_model = d_model

        # Pad only to the 128-lane granularity (no tile-multiple padding).
        self.dp = _round_up(d_model, 128)
        self.cp = _round_up(self.c_total, 128)

        # Per-generation VMEM budget / scoped limit.
        self.vmem_budget, self.vmem_limit = _vmem_budget_and_limit()

        # Fused weight: concat heads along class axis, transpose to (D, C),
        # zero-pad to (Dp, Cp), cast to the compute dtype -- all ONCE here.
        w_cat_t = jnp.concatenate(ws, axis=0).T                       # (D, C_total)
        w_cat_t = jnp.pad(w_cat_t, ((0, self.dp - d_model),
                                    (0, self.cp - self.c_total)))
        self.w_fused_t = w_cat_t.astype(compute_dtype)                # (Dp, Cp)

        b_cat = jnp.concatenate(bs, axis=0)                           # (C_total,)
        self.b_fused = jnp.pad(
            b_cat, (0, self.cp - self.c_total)).reshape(1, self.cp)   # (1, Cp) f32

    def _pick_weight_tiles(self, tm):
        """Pick (tk, tn) as divisors of (Dp, Cp) under the VMEM budget."""
        dp, cp = self.dp, self.cp
        budget = self.vmem_budget

        def footprint(tk, tn):
            return (2 * tk * tn * 2      # weight tile, double-buffered bf16
                    + 2 * tm * tk * 2    # activation tile, double-buffered bf16
                    + 2 * tm * tn * 4    # f32 output tile
                    + 2 * tn * 4)        # bias tile

        tn_cands = _divisors_desc(cp, self._TN_CAP)
        # >= 2 class blocks so v7x megacore can shard the weight stream.
        min_blocks = 2 if cp >= 256 else 1

        # Preferred: full-K weight tile (collapsed reduction axis).
        for want_blocks in (min_blocks, 1):
            for tn in tn_cands:
                if cp // tn >= want_blocks and footprint(dp, tn) <= budget:
                    return dp, tn

        # Fallback for very large d_model: K-grid with the widest tk that fits.
        for tk in _divisors_desc(dp, 4096):
            if footprint(tk, 128) <= budget:
                return tk, 128
        return 128, 128

    def __call__(self, x, num_v_queries, num_a_queries):
        B, S, D = x.shape
        M = B * num_v_queries

        # tm: multiple of 16 (bf16 sublane packing), single M tile whenever
        # possible so the weight matrix is streamed exactly once.
        tm = min(_round_up(max(M, 1), 16), self._TM_CAP)
        mp = _round_up(M, tm)
        tk, tn = self._pick_weight_tiles(tm)

        v_verb, v_noun, v_action = _visual_cls_forward(
            x, self.w_fused_t, self.b_fused,
            num_v_queries=num_v_queries,
            class_sizes=self.class_sizes,
            tm=tm, tn=tn, tk=tk, mp=mp,
            compute_dtype=self.compute_dtype,
            vmem_limit=self.vmem_limit)
        return (v_verb, v_noun, v_action, None)


if __name__ == "__main__":
    key = jax.random.PRNGKey(0)
    k_x, k_params = jax.random.split(key)

    # Small shapes consistent with the forward: x is (B, S, d_model),
    # num_v_queries selects the trailing queries along the sequence axis.
    B, S, d_model = 2, 8, 32
    num_v_queries, num_a_queries = 4, 2
    num_class = [8, 16, 24]  # verb, noun, action

    x = jax.random.normal(k_x, (B, S, d_model), dtype=jnp.float32)

    head = VisualCLSHeadPallas(num_class, d_model, k_params)
    v_verb, v_noun, v_action, audio = head(x, num_v_queries, num_a_queries)
    jax.block_until_ready((v_verb, v_noun, v_action))

    # Reference: plain-JAX linear on the same bf16-rounded values the kernel
    # consumes (weights are stored/streamed in bf16; accumulation is f32).
    M = B * num_v_queries
    xq = x[:, S - num_v_queries:, :].reshape(M, d_model)
    xq_c = xq.astype(head.compute_dtype).astype(jnp.float32)

    def ref_linear(w, b):
        w_c = w.astype(head.compute_dtype).astype(jnp.float32)
        return jnp.dot(xq_c, w_c.T, precision=jax.lax.Precision.HIGHEST) + b

    ref_verb = ref_linear(head.w_verb, head.b_verb)
    ref_noun = ref_linear(head.w_noun, head.b_noun)
    ref_action = ref_linear(head.w_action, head.b_action)

    assert v_verb.shape == (M, num_class[0])
    assert v_noun.shape == (M, num_class[1])
    assert v_action.shape == (M, num_class[2])
    assert audio is None
    assert jnp.allclose(v_verb, ref_verb, atol=2e-2, rtol=2e-2)
    assert jnp.allclose(v_noun, ref_noun, atol=2e-2, rtol=2e-2)
    assert jnp.allclose(v_action, ref_action, atol=2e-2, rtol=2e-2)

    print("KERNEL_OK")
</pallas_src>

<mosaic_0001>
module attributes {stable_mosaic.version = 11 : i64} {
  func.func @_fused_linear_kernel_2d(%arg0: i32, %arg1: i32, %arg2: memref<16x128xbf16, #tpu.memory_space<vmem>>, %arg3: memref<128x128xbf16, #tpu.memory_space<vmem>>, %arg4: memref<1x128xf32, #tpu.memory_space<vmem>>, %arg5: memref<16x128xf32, #tpu.memory_space<vmem>>) attributes {dimension_semantics = [#tpu.dimension_semantics<parallel>, #tpu.dimension_semantics<parallel>], iteration_bounds = array<i64: 1, 1>, scalar_prefetch = 0 : i64, scratch_operands = 0 : i64, tpu.core_type = #tpu.core_type<tc>, window_params = [{transform_indices = @transform_0, window_bounds = array<i64: 16, 128>}, {transform_indices = @transform_1, window_bounds = array<i64: 128, 128>}, {transform_indices = @transform_2, window_bounds = array<i64: 1, 128>}, {transform_indices = @transform_3, window_bounds = array<i64: 16, 128>}]} {
    %c0 = arith.constant 0 : index
    %c0_0 = arith.constant 0 : index
    %0 = vector.load %arg2[%c0, %c0_0] : memref<16x128xbf16, #tpu.memory_space<vmem>>, vector<16x128xbf16>
    %c0_1 = arith.constant 0 : index
    %c0_2 = arith.constant 0 : index
    %1 = vector.load %arg3[%c0_1, %c0_2] : memref<128x128xbf16, #tpu.memory_space<vmem>>, vector<128x128xbf16>
    %cst = arith.constant dense<0.000000e+00> : vector<16x128xf32>
    %2 = tpu.matmul %0, %1, %cst {dimension_numbers = #tpu.dot_dimension_numbers<[1], [0], [0], [1], [0, 0, 1, 1], [], []>} : vector<16x128xbf16>, vector<128x128xbf16>, vector<16x128xf32> -> vector<16x128xf32>
    %c0_3 = arith.constant 0 : index
    %c0_4 = arith.constant 0 : index
    %3 = vector.load %arg4[%c0_3, %c0_4] : memref<1x128xf32, #tpu.memory_space<vmem>>, vector<1x128xf32>
    %4 = vector.broadcast %3 : vector<1x128xf32> to vector<16x128xf32>
    %5 = arith.addf %2, %4 : vector<16x128xf32>
    %c0_5 = arith.constant 0 : index
    %c0_6 = arith.constant 0 : index
    %6 = vector.load %arg5[%c0_5, %c0_6] : memref<16x128xf32, #tpu.memory_space<vmem>>, vector<16x128xf32>
    tpu.vector_store %arg5[%c0_5, %c0_6], %5 {strides = array<i32>} : memref<16x128xf32, #tpu.memory_space<vmem>>, vector<16x128xf32>,
    return
  }
  func.func @transform_0(%arg0: i32, %arg1: i32) -> (i32, i32) {
    %c0_i32 = arith.constant 0 : i32
    %c0_i32_0 = arith.constant 0 : i32
    return %arg0, %c0_i32 : i32, i32
  }
  func.func @transform_1(%arg0: i32, %arg1: i32) -> (i32, i32) {
    %c0_i32 = arith.constant 0 : i32
    %c0_i32_0 = arith.constant 0 : i32
    return %c0_i32, %arg1 : i32, i32
  }
  func.func @transform_2(%arg0: i32, %arg1: i32) -> (i32, i32) {
    %c0_i32 = arith.constant 0 : i32
    %c0_i32_0 = arith.constant 0 : i32
    return %c0_i32, %arg1 : i32, i32
  }
  func.func @transform_3(%arg0: i32, %arg1: i32) -> (i32, i32) {
    %c0_i32 = arith.constant 0 : i32
    return %arg0, %arg1 : i32, i32
  }
}

</mosaic_0001>

<bundles_post_ra>
// kernel: _visual_cls_forward.1
= control target key start
LH: loop header
LB: loop body
LE: loop exit
PB: predicated region body
PF: predicated region fallthrough
CT: control target
= control target key end

     0   :  { %8 = vsyncpa [#allocation3], 0  ;;  %s233_s12 = smov [#allocation2]   ;;  %s282_s0 = inlined_call_operand.vmem [shape: bf16[16,128], index: 0, kind: input, shape index: {}]   ;;  %s283_s1 = inlined_call_operand.hbm [shape: bf16[128,128], index: 1, kind: input, shape index: {}]   ;;  %s284_s2 = inlined_call_operand.vmem [shape: f32[1,128], index: 2, kind: input, shape index: {}]   ;;  %s285_s3 = inlined_call_operand.vmem [shape: f32[16,128], index: 3, kind: output, shape index: {}]  }
   0x1   :  { %s16_s13 = sshll.u32 %s233_s12, 4  ;;  %s209_s16 = scalar_lea.hbm %s283_s1, 1024  ;;  %s17_s13 = int_to_ptr.vmem [resolvable:$true] %s16_s13 }
   0x2   :  { %p210_p0 = scmp.ne.s32.totalorder %s283_s1, %s209_s16  ;;  %p213_p1 = scmp.lt.u32.totalorder %s209_s16, %s283_s1 }
   0x4   :  { %p215_p2 = pnand %p213_p1, %p210_p0 }
   0x6   :  { %218 = shalt.err (!%p215_p2)
}
   0x7   :  { %s219_s21 = scalar_lea.vmem %s17_s13, 1024  ;;  %p224_p4 = scmp.lt.s32.totalorder %s17_s13, %s17_s13 }
   0x8   :  { %p220_p3 = scmp.ne.s32.totalorder %s17_s13, %s219_s21  ;;  %p225_p5 = scmp.lt.s32.totalorder %s219_s21, %s219_s21 }
   0xa   :  { %p226_p6 = por %p225_p5, %p224_p4 }
   0xc   :  { %p227_p7 = pnand %p226_p6, %p220_p3 }
   0xe   :  { %230 = shalt.err (!%p227_p7)
}
   0xf   :  { %s234_s22 = smov 64   ;;  %s235_s23 = smov 4  }
  0x10   :  { %22 = dma.hbm_to_vmem [thread:$0]  %s283_s1, 1024, %s17_s13, [#allocation3], %s234_s22, %s234_s22, %s235_s23  }
  0x11   :  { %231 = dma.done.wait [#allocation3], 1024  }
  0x12   :  { %232 = vsyncadd [#allocation3], 4294966272  ;;  %v236_v0 = vmov 0.0   ;;  %vm237_vm0 = vmmov 0   ;;  %v200_v1 = vld [vmem:[#allocation2] sm:$0xff]   ;;  %v201_v2 = vld [vmem:[#allocation2 + $0x8] sm:$0xff]  }
  0x13   :  { %175 = vmatprep.subr.bf16.mxu0 %v236_v0  ;;  %191 = vmatprep.mubr.msk.bf16.mxu0 %vm237_vm0, %v236_v0  ;;  %v202_v3 = vld [vmem:[#allocation2 + $0x10] sm:$0xff]   ;;  %v203_v4 = vld [vmem:[#allocation2 + $0x18] sm:$0xff]   ;;  %v204_v5 = vld [vmem:[#allocation2 + $0x20] sm:$0xff]  }
  0x14   :  { %176 = vmatpush3.bf16.msra.mxu0 %v200_v1  ;;  %v205_v6 = vld [vmem:[#allocation2 + $0x28] sm:$0xff]   ;;  %v206_v7 = vld [vmem:[#allocation2 + $0x30] sm:$0xff]   ;;  %v207_v8 = vld [vmem:[#allocation2 + $0x38] sm:$0xff]  }
  0x15   :  { %177 = vmatprep.subr.bf16.mxu0 %v236_v0  ;;  %v208_v9 = vld [vmem:[%s282_s0] sm:$0xff]  }
  0x16   :  { %v156_v10 = vld [vmem:[%s284_s2] ss:$0 sm:$0xff] }
  0x18   :  { %178 = vmatpush3.bf16.msra.mxu0 %v201_v2 }
  0x19   :  { %179 = vmatprep.subr.bf16.mxu0 %v236_v0 }
  0x1c   :  { %180 = vmatpush3.bf16.msra.mxu0 %v202_v3 }
  0x1d   :  { %181 = vmatprep.subr.bf16.mxu0 %v236_v0 }
  0x20   :  { %182 = vmatpush3.bf16.msra.mxu0 %v203_v4 }
  0x21   :  { %183 = vmatprep.subr.bf16.mxu0 %v236_v0 }
  0x24   :  { %184 = vmatpush3.bf16.msra.mxu0 %v204_v5 }
  0x25   :  { %185 = vmatprep.subr.bf16.mxu0 %v236_v0 }
  0x28   :  { %186 = vmatpush3.bf16.msra.mxu0 %v205_v6 }
  0x29   :  { %187 = vmatprep.subr.bf16.mxu0 %v236_v0 }
  0x2c   :  { %188 = vmatpush3.bf16.msra.mxu0 %v206_v7 }
  0x2d   :  { %189 = vmatprep.subr.bf16.mxu0 %v236_v0 }
  0x30   :  { %190 = vmatpush3.bf16.msra.mxu0 %v207_v8 }
  0x33   :  { %192 = vmatmul.mubr.bf16.vlgmr.msra.gmra.mrb[0].mxu0 %v208_v9 }
 0x106   :  { %v142_v11 = vpop.f32.mrb[0].mxu0 }
 0x107   :  { %v143_v12 = vadd.f32 %v156_v10, %v142_v11  ;;  %v193_v13 = vpop.f32.mrb[1].mxu0 }
 0x108   :  { %v145_v14 = vpop.f32.mrb[2].mxu0 }
 0x109   :  { %149 = vst [vmem:[%s285_s3] sm:$0xff] %v143_v12  ;;  %v146_v15 = vadd.f32 %v156_v10, %v145_v14  ;;  %v194_v16 = vpop.f32.mrb[3].mxu0 }
 0x10b   :  { %150 = vst [vmem:[%s285_s3 + $0x8] sm:$0xff] %v146_v15 }
 0x10c   :  { %155 = vsyncpa [#allocation3], 1 }

</bundles_post_ra>
